<compile_context>
chip_gen: v6e
topology: v6e:2x2x1
jax: 0.10.0
libtpu: 0.0.40
codegen_flags: <defaults>
</compile_context>

<pallas_src>
import functools

import jax
import jax.numpy as jnp
import numpy as np
from jax.experimental import pallas as pl
from jax.experimental.pallas import tpu as pltpu

_LANES = 128                          # vreg lane width
_WIDTHS = (1024, 512, 256, 128)       # preferred lane-dense view widths
_MIN_SUBLANES = {4: 8, 2: 16, 1: 32}  # min sublane multiple per itemsize
_TARGET_TILE_BYTES = 4 * 1024 * 1024  # ~4 MiB per tile
_VMEM_LIMIT_BYTES = 32 * 1024 * 1024  # room for in/out double-buffering on v5e


def _copy_kernel(x_ref, o_ref):
    # Identity forward => whole-tile copy.
    o_ref[...] = x_ref[...]


def _tiled_copy_2d(x2, donate=False):
    """Copy a (rows, width) lane-dense array through a tiled Pallas kernel."""
    rows, width = x2.shape
    itemsize = jnp.dtype(x2.dtype).itemsize
    min_sub = _MIN_SUBLANES.get(itemsize, 8)

    # Fixed large tile (multiple of the dtype's sublane minimum); the trailing
    # partial block (if any) is masked by Pallas, no divisibility search.
    target_rows = max(min_sub, _TARGET_TILE_BYTES // (width * itemsize))
    tile_rows = max(min_sub, (target_rows // min_sub) * min_sub)
    if tile_rows >= rows:
        tile_rows = rows  # single block == full array dims (always legal)
    grid = (pl.cdiv(rows, tile_rows),)

    cost = pl.CostEstimate(
        flops=0,
        transcendentals=0,
        bytes_accessed=2 * rows * width * itemsize,
    )

    return pl.pallas_call(
        _copy_kernel,
        out_shape=jax.ShapeDtypeStruct((rows, width), x2.dtype),
        grid=grid,
        in_specs=[pl.BlockSpec((tile_rows, width), lambda i: (i, 0))],
        out_specs=pl.BlockSpec((tile_rows, width), lambda i: (i, 0)),
        compiler_params=pltpu.CompilerParams(
            dimension_semantics=("parallel",),
            vmem_limit_bytes=_VMEM_LIMIT_BYTES,
        ),
        cost_estimate=cost,
        input_output_aliases=({0: 0} if donate else {}),
    )(x2)


def identity_pallas(x, donate=False):
    """Identity forward pass of `Model`, run through a Pallas TPU kernel."""
    n = x.size
    if n == 0:
        return x

    flat = x.reshape(-1)  # contiguous reshape => bitcast, no HBM copy

    # Fast path: size divisible by 128 -> zero-copy (rows, width) view,
    # widest width possible for long unmasked store runs.
    for width in _WIDTHS:
        if n % width == 0:
            out2 = _tiled_copy_2d(flat.reshape(-1, width), donate=donate)
            return out2.reshape(x.shape)

    # Ragged path (< 128-element tail, only for sizes not divisible by 128):
    # run the 128-aligned bulk through the kernel and stitch the tiny tail on.
    # TODO(synk): fold the tail into the main kernel via scalar-prefetched
    # length + masked store so the ragged path is also 2N HBM traffic.
    bulk_len = (n // _LANES) * _LANES
    if bulk_len == 0:
        return x  # fewer than 128 elements: nothing worth tiling
    bulk_out = _tiled_copy_2d(flat[:bulk_len].reshape(-1, _LANES)).reshape(-1)
    out_flat = jnp.concatenate([bulk_out, flat[bulk_len:]])
    return out_flat.reshape(x.shape)


identity_pallas_jit = jax.jit(identity_pallas)

# In-place variant: aliases the kernel output onto the donated input buffer so
# XLA does not allocate a second HBM copy of the activation. Only use when the
# caller no longer needs `x`.
identity_pallas_inplace = jax.jit(
    functools.partial(identity_pallas, donate=True), donate_argnums=0
)


if __name__ == "__main__":
    # Small deterministic input consistent with the module's forward
    # (shape-agnostic identity): batch=2, channels=4, spatial=16x16.
    key = jax.random.PRNGKey(0)
    x = jax.random.normal(key, (2, 4, 16, 16), jnp.float32)

    out = identity_pallas_jit(x)
    out = jax.block_until_ready(out)

    # Forward is the identity, so the output must equal the input exactly.
    np.testing.assert_allclose(np.asarray(out), np.asarray(x), rtol=0, atol=0)
    assert out.shape == x.shape and out.dtype == x.dtype

    print("KERNEL_OK")
</pallas_src>

<mosaic_0001>
module attributes {stable_mosaic.version = 11 : i64} {
  func.func @_copy_kernel(%arg0: i32, %arg1: memref<2x1024xf32, #tpu.memory_space<vmem>>, %arg2: memref<2x1024xf32, #tpu.memory_space<vmem>>) attributes {dimension_semantics = [#tpu.dimension_semantics<parallel>], iteration_bounds = array<i64: 1>, scalar_prefetch = 0 : i64, scratch_operands = 0 : i64, tpu.core_type = #tpu.core_type<tc>, window_params = [{transform_indices = @transform_0, window_bounds = array<i64: 2, 1024>}, {transform_indices = @transform_1, window_bounds = array<i64: 2, 1024>}]} {
    %c0 = arith.constant 0 : index
    %c0_0 = arith.constant 0 : index
    %0 = vector.load %arg1[%c0, %c0_0] : memref<2x1024xf32, #tpu.memory_space<vmem>>, vector<2x1024xf32>
    %c0_1 = arith.constant 0 : index
    %c0_2 = arith.constant 0 : index
    %1 = vector.load %arg2[%c0_1, %c0_2] : memref<2x1024xf32, #tpu.memory_space<vmem>>, vector<2x1024xf32>
    tpu.vector_store %arg2[%c0_1, %c0_2], %0 {strides = array<i32>} : memref<2x1024xf32, #tpu.memory_space<vmem>>, vector<2x1024xf32>,
    return
  }
  func.func @transform_0(%arg0: i32) -> (i32, i32) {
    %c0_i32 = arith.constant 0 : i32
    %c0_i32_0 = arith.constant 0 : i32
    return %arg0, %c0_i32 : i32, i32
  }
  func.func @transform_1(%arg0: i32) -> (i32, i32) {
    %c0_i32 = arith.constant 0 : i32
    %c0_i32_0 = arith.constant 0 : i32
    return %arg0, %c0_i32 : i32, i32
  }
}

</mosaic_0001>

<bundles_post_ra>
// kernel: identity_pallas.1
= control target key start
LH: loop header
LB: loop body
LE: loop exit
PB: predicated region body
PF: predicated region fallthrough
CT: control target
= control target key end

     0   :  { %s38_s0 = inlined_call_operand.vmem [shape: f32[2,1024], index: 0, kind: input, shape index: {}]   ;;  %s39_s1 = inlined_call_operand.vmem [shape: f32[2,1024], index: 1, kind: output, shape index: {}]  }
   0x1   :  { %v8_v0 = vld [vmem:[%s38_s0] sm:$0xff]  ;;  %v9_v1 = vld [vmem:[%s38_s0 + $0x8] sm:$0xff] }
   0x2   :  { %10 = vst [vmem:[%s39_s1] sm:$0xff] %v8_v0  ;;  %11 = vst [vmem:[%s39_s1 + $0x8] sm:$0xff] %v9_v1 }

</bundles_post_ra>
